<compile_context>
chip_gen: v7x
topology: tpu7x:2x2x1
jax: 0.10.0
libtpu: 0.0.40
codegen_flags: <defaults>
</compile_context>

<pallas_src>
import jax
import jax.numpy as jnp
from jax.experimental import pallas as pl
from jax.experimental.pallas import tpu as pltpu


def _round_up(x, m):
    return ((x + m - 1) // m) * m


def _choose_tm(b_pad, *, tm_max=2048, min_grid=4):
    """Largest batch tile (multiple of 128, divisor of b_pad) keeping grid >= min_grid.

    Falls back to the smallest candidate (most grid steps -> best pipelining /
    megacore sharding) when b_pad is too small for min_grid tiles.
    """
    candidates = [t for t in (4096, 2048, 1024, 512, 256, 128)
                  if t <= tm_max and b_pad % t == 0]
    if not candidates:
        return 128
    for t in candidates:                       # largest first
        if b_pad // t >= min_grid:
            return t
    return candidates[-1]


def mlp_kernel(x_ref,
               w1_ref, b1_ref,
               w2_ref, b2_ref,
               w3_ref, b3_ref,
               w4_ref, b4_ref,
               o_ref):
    # Cast input to bf16 in-kernel (VPU work hidden under MXU/DMA slack).
    x = x_ref[...].astype(jnp.bfloat16)
    # Layer 1: Linear(input_size, 256) + ReLU  (bf16 operands, f32 accumulate)
    h = jnp.dot(x, w1_ref[...], preferred_element_type=jnp.float32)
    h = jnp.maximum(h + b1_ref[...], 0.0)
    # Layer 2: Linear(256, 256) + ReLU
    h = jnp.dot(h.astype(jnp.bfloat16), w2_ref[...],
                preferred_element_type=jnp.float32)
    h = jnp.maximum(h + b2_ref[...], 0.0)
    # Layer 3: Linear(256, 128) + ReLU
    h = jnp.dot(h.astype(jnp.bfloat16), w3_ref[...],
                preferred_element_type=jnp.float32)
    h = jnp.maximum(h + b3_ref[...], 0.0)
    # Layer 4: Linear(128, out_size) (no activation; only valid columns written)
    h = jnp.dot(h.astype(jnp.bfloat16), w4_ref[...],
                preferred_element_type=jnp.float32)
    o_ref[...] = (h + b4_ref[...]).astype(o_ref.dtype)


def prepare_params(params):
    """One-time prep (outside the per-call path): weights -> bf16, biases -> f32."""
    prepared = {}
    for i in range(1, 5):
        prepared[f"w{i}"] = params[f"w{i}"].astype(jnp.bfloat16)
        prepared[f"b{i}"] = params[f"b{i}"].astype(jnp.float32)
    return prepared


def improved_model_forward(x, prepared, *, tm_max=2048, min_grid=4):
    """x: (B, input_size) f32. prepared: dict from prepare_params()."""
    B, in_size = x.shape
    out_size = prepared["w4"].shape[1]

    # Pad batch only to a multiple of 128 (waste < 128 rows), tile it.
    b_pad = _round_up(max(B, 128), 128)
    tm = _choose_tm(b_pad, tm_max=tm_max, min_grid=min_grid)

    xp = x if b_pad == B else jnp.pad(x, ((0, b_pad - B), (0, 0)))

    args = (xp,
            prepared["w1"], prepared["b1"],
            prepared["w2"], prepared["b2"],
            prepared["w3"], prepared["b3"],
            prepared["w4"], prepared["b4"])

    # Weights/biases: full-array blocks with constant index maps -> resident in
    # VMEM, DMA'd once across the whole grid.
    def resident(a):
        return pl.BlockSpec(a.shape, lambda i: (0,) * a.ndim)

    in_specs = [pl.BlockSpec((tm, in_size), lambda i: (i, 0))]
    in_specs += [resident(a) for a in args[1:]]
    # Output: only the valid columns (last dim == full array dim -> legal block).
    out_spec = pl.BlockSpec((tm, out_size), lambda i: (i, 0))

    weight_bytes = sum(int(a.size) * a.dtype.itemsize for a in args[1:])
    flops = 2 * b_pad * (in_size * 256 + 256 * 256 + 256 * 128 + 128 * out_size)
    bytes_accessed = (int(xp.size) * 4            # f32 input read
                      + weight_bytes              # resident params (once)
                      + b_pad * out_size * 4)     # f32 output write

    # Right-size VMEM: double-buffered x/out tiles + resident params + activation
    # headroom (f32 h + bf16 copy + slack), then 2x safety, 8..48 MiB clamp.
    vmem_need = (2 * tm * in_size * 4
                 + 2 * tm * out_size * 4
                 + weight_bytes
                 + tm * 256 * 4 * 3)
    vmem_limit = int(min(max(2 * vmem_need, 8 << 20), 48 << 20))

    out = pl.pallas_call(
        mlp_kernel,
        out_shape=jax.ShapeDtypeStruct((b_pad, out_size), jnp.float32),
        grid=(b_pad // tm,),
        in_specs=in_specs,
        out_specs=out_spec,
        compiler_params=pltpu.CompilerParams(
            dimension_semantics=("parallel",),     # megacore sharding on v7x
            vmem_limit_bytes=vmem_limit),
        cost_estimate=pl.CostEstimate(
            flops=flops, transcendentals=0, bytes_accessed=bytes_accessed),
    )(*args)

    return out if b_pad == B else out[:B]


def init_params(key, input_size, output_size):
    """Deterministic init mimicking PyTorch's default Linear init (uniform +-1/sqrt(fan_in)).
    Weights stored as (in_features, out_features)."""
    dims = [(input_size, 256), (256, 256), (256, 128), (128, output_size)]
    params = {}
    for i, (fan_in, fan_out) in enumerate(dims, start=1):
        key, kw, kb = jax.random.split(key, 3)
        bound = 1.0 / jnp.sqrt(fan_in)
        params[f"w{i}"] = jax.random.uniform(
            kw, (fan_in, fan_out), jnp.float32, -bound, bound)
        params[f"b{i}"] = jax.random.uniform(
            kb, (1, fan_out), jnp.float32, -bound, bound)
    return params


def reference_forward_f32(x, params):
    """Pure f32 reference (PyTorch-fp32 semantics)."""
    h = x
    for i in range(1, 4):
        h = jnp.maximum(h @ params[f"w{i}"] + params[f"b{i}"], 0.0)
    return h @ params["w4"] + params["b4"]


def reference_forward_matched(x, params):
    """Reference mirroring the kernel math: bf16 matmul operands, f32 accumulation."""
    h = x.astype(jnp.bfloat16)
    for i in range(1, 4):
        h = jnp.dot(h, params[f"w{i}"].astype(jnp.bfloat16),
                    preferred_element_type=jnp.float32)
        h = jnp.maximum(h + params[f"b{i}"], 0.0).astype(jnp.bfloat16)
    h = jnp.dot(h, params["w4"].astype(jnp.bfloat16),
                preferred_element_type=jnp.float32)
    return h + params["b4"]


if __name__ == "__main__":
    key = jax.random.PRNGKey(0)
    batch, input_size, output_size = 8, 32, 16

    kx, kp = jax.random.split(key)
    x = jax.random.normal(kx, (batch, input_size), jnp.float32)
    params = init_params(kp, input_size, output_size)
    prepared = prepare_params(params)          # one-time param prep (bf16/f32)

    out = improved_model_forward(x, prepared)
    out = jax.block_until_ready(out)

    assert out.shape == (batch, output_size)

    # Tight check against a reference that uses the same bf16-operand / f32-accum
    # math as the kernel.
    ref_matched = reference_forward_matched(x, params)
    assert jnp.allclose(out, ref_matched, atol=2e-3, rtol=2e-3)

    # Looser check against the pure-f32 reference (documents the bf16 cast
    # tolerance vs PyTorch fp32 semantics).
    ref_f32 = reference_forward_f32(x, params)
    assert jnp.allclose(out, ref_f32, atol=5e-2, rtol=5e-2)

    print("KERNEL_OK")
</pallas_src>

<mosaic_0001>
module attributes {stable_mosaic.version = 11 : i64} {
  func.func @mlp_kernel(%arg0: i32, %arg1: memref<128x32xf32, #tpu.memory_space<vmem>>, %arg2: memref<32x256xbf16, #tpu.memory_space<vmem>>, %arg3: memref<1x256xf32, #tpu.memory_space<vmem>>, %arg4: memref<256x256xbf16, #tpu.memory_space<vmem>>, %arg5: memref<1x256xf32, #tpu.memory_space<vmem>>, %arg6: memref<256x128xbf16, #tpu.memory_space<vmem>>, %arg7: memref<1x128xf32, #tpu.memory_space<vmem>>, %arg8: memref<128x16xbf16, #tpu.memory_space<vmem>>, %arg9: memref<1x16xf32, #tpu.memory_space<vmem>>, %arg10: memref<128x16xf32, #tpu.memory_space<vmem>>) attributes {dimension_semantics = [#tpu.dimension_semantics<parallel>], iteration_bounds = array<i64: 1>, scalar_prefetch = 0 : i64, scratch_operands = 0 : i64, tpu.core_type = #tpu.core_type<tc>, window_params = [{transform_indices = @transform_0, window_bounds = array<i64: 128, 32>}, {pipeline_mode = #tpu.pipeline_mode<synchronous>, transform_indices = @transform_1, window_bounds = array<i64: 32, 256>}, {pipeline_mode = #tpu.pipeline_mode<synchronous>, transform_indices = @transform_2, window_bounds = array<i64: 1, 256>}, {pipeline_mode = #tpu.pipeline_mode<synchronous>, transform_indices = @transform_3, window_bounds = array<i64: 256, 256>}, {pipeline_mode = #tpu.pipeline_mode<synchronous>, transform_indices = @transform_4, window_bounds = array<i64: 1, 256>}, {pipeline_mode = #tpu.pipeline_mode<synchronous>, transform_indices = @transform_5, window_bounds = array<i64: 256, 128>}, {pipeline_mode = #tpu.pipeline_mode<synchronous>, transform_indices = @transform_6, window_bounds = array<i64: 1, 128>}, {pipeline_mode = #tpu.pipeline_mode<synchronous>, transform_indices = @transform_7, window_bounds = array<i64: 128, 16>}, {pipeline_mode = #tpu.pipeline_mode<synchronous>, transform_indices = @transform_8, window_bounds = array<i64: 1, 16>}, {transform_indices = @transform_9, window_bounds = array<i64: 128, 16>}]} {
    %c0 = arith.constant 0 : index
    %c0_0 = arith.constant 0 : index
    %0 = vector.load %arg1[%c0, %c0_0] : memref<128x32xf32, #tpu.memory_space<vmem>>, vector<128x32xf32>
    %1 = arith.truncf %0 : vector<128x32xf32> to vector<128x32xbf16>
    %c0_1 = arith.constant 0 : index
    %c0_2 = arith.constant 0 : index
    %2 = vector.load %arg2[%c0_1, %c0_2] : memref<32x256xbf16, #tpu.memory_space<vmem>>, vector<32x256xbf16>
    %cst = arith.constant dense<0.000000e+00> : vector<128x256xf32>
    %3 = tpu.matmul %1, %2, %cst {dimension_numbers = #tpu.dot_dimension_numbers<[1], [0], [0], [1], [0, 0, 1, 1], [], []>} : vector<128x32xbf16>, vector<32x256xbf16>, vector<128x256xf32> -> vector<128x256xf32>
    %c0_3 = arith.constant 0 : index
    %c0_4 = arith.constant 0 : index
    %4 = vector.load %arg3[%c0_3, %c0_4] : memref<1x256xf32, #tpu.memory_space<vmem>>, vector<1x256xf32>
    %5 = vector.broadcast %4 : vector<1x256xf32> to vector<128x256xf32>
    %6 = arith.addf %3, %5 : vector<128x256xf32>
    %cst_5 = arith.constant 0.000000e+00 : f32
    %7 = vector.broadcast %cst_5 : f32 to vector<128x256xf32>
    %8 = arith.maximumf %6, %7 : vector<128x256xf32>
    %9 = arith.truncf %8 : vector<128x256xf32> to vector<128x256xbf16>
    %c0_6 = arith.constant 0 : index
    %c0_7 = arith.constant 0 : index
    %10 = vector.load %arg4[%c0_6, %c0_7] : memref<256x256xbf16, #tpu.memory_space<vmem>>, vector<256x256xbf16>
    %cst_8 = arith.constant dense<0.000000e+00> : vector<128x256xf32>
    %11 = tpu.matmul %9, %10, %cst_8 {dimension_numbers = #tpu.dot_dimension_numbers<[1], [0], [0], [1], [0, 0, 1, 1], [], []>} : vector<128x256xbf16>, vector<256x256xbf16>, vector<128x256xf32> -> vector<128x256xf32>
    %c0_9 = arith.constant 0 : index
    %c0_10 = arith.constant 0 : index
    %12 = vector.load %arg5[%c0_9, %c0_10] : memref<1x256xf32, #tpu.memory_space<vmem>>, vector<1x256xf32>
    %13 = vector.broadcast %12 : vector<1x256xf32> to vector<128x256xf32>
    %14 = arith.addf %11, %13 : vector<128x256xf32>
    %cst_11 = arith.constant 0.000000e+00 : f32
    %15 = vector.broadcast %cst_11 : f32 to vector<128x256xf32>
    %16 = arith.maximumf %14, %15 : vector<128x256xf32>
    %17 = arith.truncf %16 : vector<128x256xf32> to vector<128x256xbf16>
    %c0_12 = arith.constant 0 : index
    %c0_13 = arith.constant 0 : index
    %18 = vector.load %arg6[%c0_12, %c0_13] : memref<256x128xbf16, #tpu.memory_space<vmem>>, vector<256x128xbf16>
    %cst_14 = arith.constant dense<0.000000e+00> : vector<128x128xf32>
    %19 = tpu.matmul %17, %18, %cst_14 {dimension_numbers = #tpu.dot_dimension_numbers<[1], [0], [0], [1], [0, 0, 1, 1], [], []>} : vector<128x256xbf16>, vector<256x128xbf16>, vector<128x128xf32> -> vector<128x128xf32>
    %c0_15 = arith.constant 0 : index
    %c0_16 = arith.constant 0 : index
    %20 = vector.load %arg7[%c0_15, %c0_16] : memref<1x128xf32, #tpu.memory_space<vmem>>, vector<1x128xf32>
    %21 = vector.broadcast %20 : vector<1x128xf32> to vector<128x128xf32>
    %22 = arith.addf %19, %21 : vector<128x128xf32>
    %cst_17 = arith.constant 0.000000e+00 : f32
    %23 = vector.broadcast %cst_17 : f32 to vector<128x128xf32>
    %24 = arith.maximumf %22, %23 : vector<128x128xf32>
    %25 = arith.truncf %24 : vector<128x128xf32> to vector<128x128xbf16>
    %c0_18 = arith.constant 0 : index
    %c0_19 = arith.constant 0 : index
    %26 = vector.load %arg8[%c0_18, %c0_19] : memref<128x16xbf16, #tpu.memory_space<vmem>>, vector<128x16xbf16>
    %cst_20 = arith.constant dense<0.000000e+00> : vector<128x16xf32>
    %27 = tpu.matmul %25, %26, %cst_20 {dimension_numbers = #tpu.dot_dimension_numbers<[1], [0], [0], [1], [0, 0, 1, 1], [], []>} : vector<128x128xbf16>, vector<128x16xbf16>, vector<128x16xf32> -> vector<128x16xf32>
    %c0_21 = arith.constant 0 : index
    %c0_22 = arith.constant 0 : index
    %28 = vector.load %arg9[%c0_21, %c0_22] : memref<1x16xf32, #tpu.memory_space<vmem>>, vector<1x16xf32>
    %29 = vector.broadcast %28 : vector<1x16xf32> to vector<128x16xf32>
    %30 = arith.addf %27, %29 : vector<128x16xf32>
    %c0_23 = arith.constant 0 : index
    %c0_24 = arith.constant 0 : index
    %31 = vector.load %arg10[%c0_23, %c0_24] : memref<128x16xf32, #tpu.memory_space<vmem>>, vector<128x16xf32>
    tpu.vector_store %arg10[%c0_23, %c0_24], %30 {strides = array<i32>} : memref<128x16xf32, #tpu.memory_space<vmem>>, vector<128x16xf32>,
    return
  }
  func.func @transform_0(%arg0: i32) -> (i32, i32) {
    %c0_i32 = arith.constant 0 : i32
    %c0_i32_0 = arith.constant 0 : i32
    return %arg0, %c0_i32 : i32, i32
  }
  func.func @transform_1(%arg0: i32) -> (i32, i32) {
    %c0_i32 = arith.constant 0 : i32
    %c0_i32_0 = arith.constant 0 : i32
    %c0_i32_1 = arith.constant 0 : i32
    return %c0_i32, %c0_i32_0 : i32, i32
  }
  func.func @transform_2(%arg0: i32) -> (i32, i32) {
    %c0_i32 = arith.constant 0 : i32
    %c0_i32_0 = arith.constant 0 : i32
    %c0_i32_1 = arith.constant 0 : i32
    return %c0_i32, %c0_i32_0 : i32, i32
  }
  func.func @transform_3(%arg0: i32) -> (i32, i32) {
    %c0_i32 = arith.constant 0 : i32
    %c0_i32_0 = arith.constant 0 : i32
    %c0_i32_1 = arith.constant 0 : i32
    return %c0_i32, %c0_i32_0 : i32, i32
  }
  func.func @transform_4(%arg0: i32) -> (i32, i32) {
    %c0_i32 = arith.constant 0 : i32
    %c0_i32_0 = arith.constant 0 : i32
    %c0_i32_1 = arith.constant 0 : i32
    return %c0_i32, %c0_i32_0 : i32, i32
  }
  func.func @transform_5(%arg0: i32) -> (i32, i32) {
    %c0_i32 = arith.constant 0 : i32
    %c0_i32_0 = arith.constant 0 : i32
    %c0_i32_1 = arith.constant 0 : i32
    return %c0_i32, %c0_i32_0 : i32, i32
  }
  func.func @transform_6(%arg0: i32) -> (i32, i32) {
    %c0_i32 = arith.constant 0 : i32
    %c0_i32_0 = arith.constant 0 : i32
    %c0_i32_1 = arith.constant 0 : i32
    return %c0_i32, %c0_i32_0 : i32, i32
  }
  func.func @transform_7(%arg0: i32) -> (i32, i32) {
    %c0_i32 = arith.constant 0 : i32
    %c0_i32_0 = arith.constant 0 : i32
    %c0_i32_1 = arith.constant 0 : i32
    return %c0_i32, %c0_i32_0 : i32, i32
  }
  func.func @transform_8(%arg0: i32) -> (i32, i32) {
    %c0_i32 = arith.constant 0 : i32
    %c0_i32_0 = arith.constant 0 : i32
    %c0_i32_1 = arith.constant 0 : i32
    return %c0_i32, %c0_i32_0 : i32, i32
  }
  func.func @transform_9(%arg0: i32) -> (i32, i32) {
    %c0_i32 = arith.constant 0 : i32
    %c0_i32_0 = arith.constant 0 : i32
    return %arg0, %c0_i32 : i32, i32
  }
}

</mosaic_0001>

<bundles_post_ra>
// kernel: tpu_custom_call.1
= control target key start
LH: loop header
LB: loop body
LE: loop exit
PB: predicated region body
PF: predicated region fallthrough
CT: control target
= control target key end

     0   :  { %14 = vsyncpa [#allocation3], 0  ;;  %s1408_s30 = smov [#allocation2]   ;;  %s1800_s0 = inlined_call_operand.vmem [shape: f32[128,32], index: 0, kind: input, shape index: {}]   ;;  %s1801_s1 = inlined_call_operand.vmem [shape: bf16[32,256], index: 1, kind: input, shape index: {}]   ;;  %s1802_s2 = inlined_call_operand.vmem [shape: f32[1,256], index: 2, kind: input, shape index: {}]   ;;  %s1803_s3 = inlined_call_operand.hbm [shape: bf16[256,256], index: 3, kind: input, shape index: {}]   ;;  %s1804_s4 = inlined_call_operand.vmem [shape: f32[1,256], index: 4, kind: input, shape index: {}]   ;;  %s1805_s5 = inlined_call_operand.vmem [shape: bf16[256,128], index: 5, kind: input, shape index: {}]   ;;  %s1806_s6 = inlined_call_operand.vmem [shape: f32[1,128], index: 6, kind: input, shape index: {}]   ;;  %s1807_s7 = inlined_call_operand.vmem [shape: bf16[128,16], index: 7, kind: input, shape index: {}]   ;;  %s1808_s8 = inlined_call_operand.vmem [shape: f32[1,16], index: 8, kind: input, shape index: {}]   ;;  %s1809_s9 = inlined_call_operand.vmem [shape: f32[128,16], index: 9, kind: output, shape index: {}]  }
   0x1   :  { %s26_s10 = sshll.u32 %s1408_s30, 4  ;;  %s1384_s13 = scalar_lea.hbm %s1803_s3, 4096  ;;  %s27_s10 = int_to_ptr.vmem [resolvable:$true] %s26_s10 }
   0x2   :  { %p1385_p0 = scmp.ne.s32.totalorder %s1803_s3, %s1384_s13  ;;  %p1388_p1 = scmp.lt.u32.totalorder %s1384_s13, %s1803_s3 }
   0x4   :  { %p1390_p2 = pnand %p1388_p1, %p1385_p0 }
   0x6   :  { %1393 = shalt.err (!%p1390_p2)
}
   0x7   :  { %s1394_s18 = scalar_lea.vmem %s27_s10, 4096  ;;  %p1399_p4 = scmp.lt.s32.totalorder %s27_s10, %s27_s10 }
   0x8   :  { %p1395_p3 = scmp.ne.s32.totalorder %s27_s10, %s1394_s18  ;;  %p1400_p5 = scmp.lt.s32.totalorder %s1394_s18, %s1394_s18 }
   0xa   :  { %p1401_p6 = por %p1400_p5, %p1399_p4 }
   0xc   :  { %p1402_p7 = pnand %p1401_p6, %p1395_p3 }
   0xe   :  { %1405 = shalt.err (!%p1402_p7)
}
   0xf   :  { %s1409_s19 = smov 128   ;;  %s1410_s20 = smov 8  }
  0x10   :  { %32 = dma.hbm_to_vmem [thread:$0]  %s1803_s3, 4096, %s27_s10, [#allocation3], %s1409_s19, %s1409_s19, %s1410_s20  }
  0x11   :  { %1406 = dma.done.wait [#allocation3], 4096  }
  0x12   :  { %1407 = vsyncadd [#allocation3], 4294963200  ;;  %v1411_v0 = vmov 0   ;;  %v1306_v1 = vld [vmem:[%s1801_s1 + $0x4] ss:$8 sps:$4 sm:$0xff]   ;;  %vm107_vm0 = vcmask 261120  }
  0x13   :  { %164 = vmatprep.mubr.bf16.mxu0 %v1411_v0  ;;  %v1308_v2 = vld [vmem:[%s1801_s1] ss:$8 sps:$4 sm:$0xff]   ;;  %132 = vmatprep.subr.bf16.mxu0 %v1306_v1  ;;  %v1309_v3 = vld [vmem:[%s1801_s1 + $0x14] ss:$8 sps:$4 sm:$0xff]   ;;  %v1311_v4 = vld [vmem:[%s1801_s1 + $0x10] ss:$8 sps:$4 sm:$0xff]  }
  0x14   :  { %133 = vmatpush1.bf16.msra.mxu0 %v1308_v2  ;;  %v47_v5 = vld [vmem:[%s1800_s0] sm:$0xff]  ;;  %v48_v6 = vld [vmem:[%s1800_s0 + $0x8] sm:$0xff]  ;;  %v49_v10 = vld [vmem:[%s1800_s0 + $0x10] sm:$0xff]  ;;  %vm1082_vm1 = vcmask 130048  }
  0x15   :  { %134 = vmatprep.subr.bf16.mxu0 %v1309_v3  ;;  %v63_v7 = vpack.c.bf16 %v48_v6, %v47_v5  ;;  %v1312_v8 = vld [vmem:[#allocation2 + $0x4] ss:$8 sps:$4 sm:$0xff]   ;;  %v1314_v9 = vld [vmem:[#allocation2] ss:$8 sps:$4 sm:$0xff]   ;;  %v1315_v11 = vld [vmem:[#allocation2 + $0x14] ss:$8 sps:$4 sm:$0xff]  }
  0x16   :  { %497 = vmatprep.subr.bf16.mxu1 %v1312_v8  ;;  %v50_v12 = vld [vmem:[%s1800_s0 + $0x18] sm:$0xff]  ;;  %v1318_v14 = vld [vmem:[#allocation2 + $0x24] ss:$8 sps:$4 sm:$0xff]   ;;  %v1320_v16 = vld [vmem:[#allocation2 + $0x20] ss:$8 sps:$4 sm:$0xff]  }
  0x17   :  { %498 = vmatpush1.bf16.msra.mxu1 %v1314_v9  ;;  %v1317_v13 = vld [vmem:[#allocation2 + $0x10] ss:$8 sps:$4 sm:$0xff]   ;;  %v64_v15 = vpack.c.bf16 %v50_v12, %v49_v10  ;;  %v1321_v17 = vld [vmem:[#allocation2 + $0x34] ss:$8 sps:$4 sm:$0xff]   ;;  %v51_v18 = vld [vmem:[%s1800_s0 + $0x20] sm:$0xff] }
  0x18   :  { %135 = vmatpush1.bf16.msra.mxu0 %v1311_v4  ;;  %499 = vmatprep.subr.bf16.mxu1 %v1315_v11  ;;  %v52_v19 = vld [vmem:[%s1800_s0 + $0x28] sm:$0xff]  ;;  %v1323_v20 = vld [vmem:[#allocation2 + $0x30] ss:$8 sps:$4 sm:$0xff]   ;;  %v1327_v24 = vld [vmem:[#allocation2 + $0x54] ss:$8 sps:$4 sm:$0xff]   ;;  %v77_v11 = vlaneseq }
  0x19   :  { %v1324_v21 = vld [vmem:[#allocation2 + $0x44] ss:$8 sps:$4 sm:$0xff]   ;;  %v65_v22 = vpack.c.bf16 %v52_v19, %v51_v18  ;;  %v1326_v23 = vld [vmem:[#allocation2 + $0x40] ss:$8 sps:$4 sm:$0xff]   ;;  %v53_v25 = vld [vmem:[%s1800_s0 + $0x30] sm:$0xff] }
  0x1a   :  { %v54_v26 = vld [vmem:[%s1800_s0 + $0x38] sm:$0xff]  ;;  %v1330_v28 = vld [vmem:[#allocation2 + $0x64] ss:$8 sps:$4 sm:$0xff]   ;;  %v1332_v29 = vld [vmem:[#allocation2 + $0x60] ss:$8 sps:$4 sm:$0xff]   ;;  %v1592_v12 = vshrl.u32 %v77_v11, 7 }
  0x1b   :  { %1108 = vmatmul.mubr.msk.bf16.vlgmr.msra.gmra.mrb[0].mxu0 %vm107_vm0, %v63_v7  ;;  %500 = vmatpush1.bf16.msra.mxu1 %v1317_v13  ;;  %v1329_v27 = vld [vmem:[#allocation2 + $0x50] ss:$8 sps:$4 sm:$0xff]   ;;  %v66_v30 = vpack.c.bf16 %v54_v26, %v53_v25  ;;  %v1333_v31 = vld [vmem:[#allocation2 + $0x74] ss:$8 sps:$4 sm:$0xff]   ;;  %v55_v32 = vld [vmem:[%s1800_s0 + $0x40] sm:$0xff] }
  0x1c   :  { %174 = vmatprep.mubr.bf16.mxu0 %v1411_v0  ;;  %501 = vmatprep.subr.bf16.mxu1 %v1318_v14  ;;  %v56_v33 = vld [vmem:[%s1800_s0 + $0x48] sm:$0xff]  ;;  %v1335_v34 = vld [vmem:[#allocation2 + $0x70] ss:$8 sps:$4 sm:$0xff]   ;;  %v1339_v38 = vld [vmem:[#allocation2 + $0x94] ss:$8 sps:$4 sm:$0xff]   ;;  %v79_v13 = vsub.s32 0, %v1592_v12 }
  0x1d   :  { %v1336_v35 = vld [vmem:[#allocation2 + $0x84] ss:$8 sps:$4 sm:$0xff]   ;;  %v1338_v36 = vld [vmem:[#allocation2 + $0x80] ss:$8 sps:$4 sm:$0xff]   ;;  %v67_v37 = vpack.c.bf16 %v56_v33, %v55_v32  ;;  %v57_v39 = vld [vmem:[%s1800_s0 + $0x50] sm:$0xff] }
  0x1e   :  { %v58_v40 = vld [vmem:[%s1800_s0 + $0x58] sm:$0xff]  ;;  %v1342_v42 = vld [vmem:[#allocation2 + $0xa4] ss:$8 sps:$4 sm:$0xff]   ;;  %v1344_v44 = vld [vmem:[#allocation2 + $0xa0] ss:$8 sps:$4 sm:$0xff]  }
  0x1f   :  { %502 = vmatpush1.bf16.msra.mxu1 %v1320_v16  ;;  %v1341_v41 = vld [vmem:[#allocation2 + $0x90] ss:$8 sps:$4 sm:$0xff]   ;;  %v68_v43 = vpack.c.bf16 %v58_v40, %v57_v39  ;;  %v1345_v45 = vld [vmem:[#allocation2 + $0xb4] ss:$8 sps:$4 sm:$0xff]   ;;  %v59_v46 = vld [vmem:[%s1800_s0 + $0x60] sm:$0xff] }
  0x20   :  { %503 = vmatprep.subr.bf16.mxu1 %v1321_v17  ;;  %v60_v47 = vld [vmem:[%s1800_s0 + $0x68] sm:$0xff]  ;;  %v1347_v48 = vld [vmem:[#allocation2 + $0xb0] ss:$8 sps:$4 sm:$0xff]   ;;  %v1351_v52 = vld [vmem:[#allocation2 + $0xd4] ss:$8 sps:$4 sm:$0xff]  }
  0x21   :  { %v1348_v49 = vld [vmem:[#allocation2 + $0xc4] ss:$8 sps:$4 sm:$0xff]   ;;  %v69_v50 = vpack.c.bf16 %v60_v47, %v59_v46  ;;  %v1350_v51 = vld [vmem:[#allocation2 + $0xc0] ss:$8 sps:$4 sm:$0xff]   ;;  %v61_v53 = vld [vmem:[%s1800_s0 + $0x70] sm:$0xff] }
  0x22   :  { %v62_v54 = vld [vmem:[%s1800_s0 + $0x78] sm:$0xff]  ;;  %v1354_v57 = vld [vmem:[#allocation2 + $0xe4] ss:$8 sps:$4 sm:$0xff]   ;;  %v1356_v58 = vld [vmem:[#allocation2 + $0xe0] ss:$8 sps:$4 sm:$0xff]  }
  0x23   :  { %1109 = vmatmul.mubr.msk.bf16.gmra.mrb[4].mxu0 %vm107_vm0, %v64_v15  ;;  %504 = vmatpush1.bf16.msra.mxu1 %v1323_v20  ;;  %v70_v55 = vpack.c.bf16 %v62_v54, %v61_v53  ;;  %v1353_v56 = vld [vmem:[#allocation2 + $0xd0] ss:$8 sps:$4 sm:$0xff]   ;;  %v1357_v59 = vld [vmem:[#allocation2 + $0xf4] ss:$8 sps:$4 sm:$0xff]   ;;  %v1360_v61 = vld [vmem:[%s1805_s5 + $0x40] sm:$0xff]   ;;  %v83_v15 = vsub.s32 1, %v1592_v12 }
  0x24   :  { %184 = vmatprep.mubr.bf16.mxu0 %v1411_v0  ;;  %505 = vmatprep.subr.bf16.mxu1 %v1324_v21  ;;  %v1359_v60 = vld [vmem:[#allocation2 + $0xf0] ss:$8 sps:$4 sm:$0xff]   ;;  %v1361_v62 = vld [vmem:[%s1805_s5] sm:$0xff]   ;;  %v1362_v63 = vld [vmem:[%s1805_s5 + $0x48] sm:$0xff]  }
  0x25   :  { %1174 = vmatprep.subr.bf16.mxu0 %v1360_v61  ;;  %v1364_v1 = vld [vmem:[%s1805_s5 + $0x50] sm:$0xff]   ;;  %v1366_v3 = vld [vmem:[%s1805_s5 + $0x58] sm:$0xff]   ;;  %v1368_v5 = vld [vmem:[%s1805_s5 + $0x60] sm:$0xff]  }
  0x26   :  { %1175 = vmatpush3.bf16.msra.mxu0 %v1361_v62  ;;  %v1365_v2 = vld [vmem:[%s1805_s5 + $0x10] sm:$0xff]   ;;  %v1367_v4 = vld [vmem:[%s1805_s5 + $0x18] sm:$0xff]   ;;  %v1369_v6 = vld [vmem:[%s1805_s5 + $0x20] sm:$0xff]  }
  0x27   :  { %506 = vmatpush1.bf16.msra.mxu1 %v1326_v23  ;;  %1176 = vmatprep.subr.bf16.mxu0 %v1362_v63  ;;  %v1370_v7 = vld [vmem:[%s1805_s5 + $0x68] sm:$0xff]   ;;  %v1372_v9 = vld [vmem:[%s1805_s5 + $0x70] sm:$0xff]   ;;  %v75_v14 = vld [vmem:[%s1802_s2] sm:$0x3] }
  0x28   :  { %507 = vmatprep.subr.bf16.mxu1 %v1327_v24  ;;  %v1371_v8 = vld [vmem:[%s1805_s5 + $0x28] sm:$0xff]   ;;  %v1373_v10 = vld [vmem:[%s1805_s5 + $0x30] sm:$0xff]   ;;  %v1601_v16 = vrot.slane %v75_v14, %v79_v13  ;;  %v1605_v17 = vrot.slane %v75_v14, %v83_v15 }
  0x2b   :  { %1110 = vmatmul.mubr.msk.bf16.gmra.mrb[8].mxu0 %vm107_vm0, %v65_v22  ;;  %508 = vmatpush1.bf16.msra.mxu1 %v1329_v27 }
  0x2c   :  { %194 = vmatprep.mubr.bf16.mxu0 %v1411_v0  ;;  %509 = vmatprep.subr.bf16.mxu1 %v1330_v28 }
  0x2f   :  { %510 = vmatpush1.bf16.msra.mxu1 %v1332_v29 }
  0x30   :  { %511 = vmatprep.subr.bf16.mxu1 %v1333_v31 }
  0x33   :  { %1111 = vmatmul.mubr.msk.bf16.gmra.mrb[12].mxu0 %vm107_vm0, %v66_v30  ;;  %512 = vmatpush1.bf16.msra.mxu1 %v1335_v34 }
  0x34   :  { %204 = vmatprep.mubr.bf16.mxu0 %v1411_v0  ;;  %513 = vmatprep.subr.bf16.mxu1 %v1336_v35 }
  0x37   :  { %514 = vmatpush1.bf16.msra.mxu1 %v1338_v36 }
  0x38   :  { %515 = vmatprep.subr.bf16.mxu1 %v1339_v38 }
  0x3b   :  { %1112 = vmatmul.mubr.msk.bf16.gmra.mrb[16].mxu0 %vm107_vm0, %v67_v37  ;;  %516 = vmatpush1.bf16.msra.mxu1 %v1341_v41 }
  0x3c   :  { %214 = vmatprep.mubr.bf16.mxu0 %v1411_v0  ;;  %517 = vmatprep.subr.bf16.mxu1 %v1342_v42 }
  0x3f   :  { %518 = vmatpush1.bf16.msra.mxu1 %v1344_v44 }
  0x40   :  { %519 = vmatprep.subr.bf16.mxu1 %v1345_v45 }
  0x43   :  { %1113 = vmatmul.mubr.msk.bf16.gmra.mrb[20].mxu0 %vm107_vm0, %v68_v43  ;;  %520 = vmatpush1.bf16.msra.mxu1 %v1347_v48 }
  0x44   :  { %224 = vmatprep.mubr.bf16.mxu0 %v1411_v0  ;;  %521 = vmatprep.subr.bf16.mxu1 %v1348_v49 }
  0x47   :  { %522 = vmatpush1.bf16.msra.mxu1 %v1350_v51 }
  0x48   :  { %523 = vmatprep.subr.bf16.mxu1 %v1351_v52 }
  0x4b   :  { %1114 = vmatmul.mubr.msk.bf16.gmra.mrb[24].mxu0 %vm107_vm0, %v69_v50  ;;  %524 = vmatpush1.bf16.msra.mxu1 %v1353_v56 }
  0x4c   :  { %234 = vmatprep.mubr.bf16.mxu0 %v1411_v0  ;;  %525 = vmatprep.subr.bf16.mxu1 %v1354_v57  ;;  %v1363_v0 = vld [vmem:[%s1805_s5 + $0x8] sm:$0xff]  }
  0x4d   :  { %1177 = vmatpush3.bf16.msra.mxu0 %v1363_v0 }
  0x4e   :  { %1178 = vmatprep.subr.bf16.mxu0 %v1364_v1 }
  0x4f   :  { %526 = vmatpush1.bf16.msra.mxu1 %v1356_v58 }
  0x50   :  { %527 = vmatprep.subr.bf16.mxu1 %v1357_v59 }
  0x51   :  { %1179 = vmatpush3.bf16.msra.mxu0 %v1365_v2 }
  0x52   :  { %1180 = vmatprep.subr.bf16.mxu0 %v1366_v3 }
  0x53   :  { %1115 = vmatmul.mubr.msk.bf16.gmra.mrb[28].mxu0 %vm107_vm0, %v70_v55  ;;  %528 = vmatpush1.bf16.msra.mxu1 %v1359_v60 }
  0x55   :  { %1181 = vmatpush3.bf16.msra.mxu0 %v1367_v4 }
  0x56   :  { %1182 = vmatprep.subr.bf16.mxu0 %v1368_v5 }
  0x59   :  { %1183 = vmatpush3.bf16.msra.mxu0 %v1369_v6 }
  0x5a   :  { %1184 = vmatprep.subr.bf16.mxu0 %v1370_v7 }
  0x5d   :  { %1185 = vmatpush3.bf16.msra.mxu0 %v1371_v8 }
  0x5e   :  { %1186 = vmatprep.subr.bf16.mxu0 %v1372_v9 }
  0x61   :  { %1187 = vmatpush3.bf16.msra.mxu0 %v1373_v10 }
  0xee   :  { %v166_v18 = vpop.f32.mrb[0].mxu0 }
  0xef   :  { %v167_v19 = vadd.f32 %v166_v18, %v1601_v16  ;;  %v168_v20 = vpop.f32.mrb[1].mxu0 }
  0xf0   :  { %v169_v21 = vadd.f32 %v168_v20, %v1605_v17  ;;  %v170_v22 = vpop.f32.mrb[2].mxu0 }
  0xf1   :  { %v171_v23 = vadd.f32 %v170_v22, %v1601_v16  ;;  %v172_v24 = vpop.f32.mrb[3].mxu0  ;;  %v245_v26 = vmax.f32 %v167_v19, 0.0 }
  0xf2   :  { %v173_v25 = vadd.f32 %v172_v24, %v1605_v17  ;;  %v246_v28 = vmax.f32 %v169_v21, 0.0 }
  0xf3   :  { %v247_v27 = vmax.f32 %v171_v23, 0.0 }
  0xf4   :  { %v248_v29 = vmax.f32 %v173_v25, 0.0 }
  0xf5   :  { %v277_v30 = vpack.c.bf16 %v247_v27, %v245_v26 }
  0xf6   :  { %v176_v31 = vpop.f32.mrb[4].mxu0  ;;  %v278_v32 = vpack.c.bf16 %v248_v29, %v246_v28 }
  0xf7   :  { %v177_v33 = vadd.f32 %v176_v31, %v1601_v16  ;;  %v178_v34 = vpop.f32.mrb[5].mxu0 }
  0xf8   :  { %v179_v35 = vadd.f32 %v178_v34, %v1605_v17  ;;  %v180_v36 = vpop.f32.mrb[6].mxu0  ;;  %529 = vmatprep.mubr.bf16.mxu1 %v278_v32 }
  0xf9   :  { %v181_v37 = vadd.f32 %v180_v36, %v1601_v16  ;;  %v182_v38 = vpop.f32.mrb[7].mxu0  ;;  %530 = vmatmul.mubr.bf16.vlgmr.msra.gmra.mrb[0].mxu1 %v277_v30  ;;  %v249_v40 = vmax.f32 %v177_v33, 0.0 }
  0xfa   :  { %v183_v39 = vadd.f32 %v182_v38, %v1605_v17  ;;  %v250_v42 = vmax.f32 %v179_v35, 0.0 }
  0xfb   :  { %v251_v41 = vmax.f32 %v181_v37, 0.0 }
  0xfc   :  { %v252_v43 = vmax.f32 %v183_v39, 0.0 }
  0xfd   :  { %v279_v44 = vpack.c.bf16 %v251_v41, %v249_v40 }
  0xfe   :  { %v280_v45 = vpack.c.bf16 %v252_v43, %v250_v42  ;;  %v186_v46 = vpop.f32.mrb[8].mxu0 }
  0xff   :  { %v187_v47 = vadd.f32 %v186_v46, %v1601_v16  ;;  %v188_v48 = vpop.f32.mrb[9].mxu0 }
 0x100   :  { %v189_v49 = vadd.f32 %v188_v48, %v1605_v17  ;;  %v190_v50 = vpop.f32.mrb[10].mxu0  ;;  %539 = vmatprep.mubr.bf16.mxu1 %v280_v45 }
 0x101   :  { %v191_v51 = vadd.f32 %v190_v50, %v1601_v16  ;;  %v192_v52 = vpop.f32.mrb[11].mxu0  ;;  %540 = vmatmul.mubr.bf16.gmra.mrb[4].mxu1 %v279_v44  ;;  %v253_v54 = vmax.f32 %v187_v47, 0.0 }
 0x102   :  { %v193_v53 = vadd.f32 %v192_v52, %v1605_v17  ;;  %v254_v56 = vmax.f32 %v189_v49, 0.0 }
 0x103   :  { %v255_v55 = vmax.f32 %v191_v51, 0.0 }
 0x104   :  { %v256_v57 = vmax.f32 %v193_v53, 0.0 }
 0x105   :  { %v281_v58 = vpack.c.bf16 %v255_v55, %v253_v54 }
 0x106   :  { %v282_v59 = vpack.c.bf16 %v256_v57, %v254_v56  ;;  %v196_v60 = vpop.f32.mrb[12].mxu0 }
 0x107   :  { %v197_v61 = vadd.f32 %v196_v60, %v1601_v16  ;;  %v198_v62 = vpop.f32.mrb[13].mxu0 }
 0x108   :  { %v199_v63 = vadd.f32 %v198_v62, %v1605_v17  ;;  %v200_v0 = vpop.f32.mrb[14].mxu0  ;;  %549 = vmatprep.mubr.bf16.mxu1 %v282_v59 }
 0x109   :  { %v201_v1 = vadd.f32 %v200_v0, %v1601_v16  ;;  %v202_v2 = vpop.f32.mrb[15].mxu0  ;;  %550 = vmatmul.mubr.bf16.gmra.mrb[8].mxu1 %v281_v58  ;;  %v257_v4 = vmax.f32 %v197_v61, 0.0 }
 0x10a   :  { %v203_v3 = vadd.f32 %v202_v2, %v1605_v17  ;;  %v258_v6 = vmax.f32 %v199_v63, 0.0 }
 0x10b   :  { %v259_v5 = vmax.f32 %v201_v1, 0.0 }
 0x10c   :  { %v260_v7 = vmax.f32 %v203_v3, 0.0 }
 0x10d   :  { %v283_v8 = vpack.c.bf16 %v259_v5, %v257_v4 }
 0x10e   :  { %v284_v9 = vpack.c.bf16 %v260_v7, %v258_v6  ;;  %v206_v10 = vpop.f32.mrb[16].mxu0  ;;  %v1374_v7 = vld [vmem:[%s1805_s5 + $0x78] sm:$0xff]  }
 0x10f   :  { %v207_v11 = vadd.f32 %v206_v10, %v1601_v16  ;;  %v208_v14 = vpop.f32.mrb[17].mxu0  ;;  %1188 = vmatprep.subr.bf16.mxu0 %v1374_v7  ;;  %v325_v10 = vld [vmem:[%s1804_s4] sm:$0x3] }
 0x110   :  { %v209_v18 = vadd.f32 %v208_v14, %v1605_v17  ;;  %v210_v19 = vpop.f32.mrb[18].mxu0  ;;  %559 = vmatprep.mubr.bf16.mxu1 %v284_v9  ;;  %v1378_v9 = vld [vmem:[%s1807_s7 + $0x10] sm:$0xff]   ;;  %v1663_v14 = vrot.slane %v325_v10, %v83_v15 }
 0x111   :  { %v211_v20 = vadd.f32 %v210_v19, %v1601_v16  ;;  %v212_v21 = vpop.f32.mrb[19].mxu0  ;;  %560 = vmatmul.mubr.bf16.gmra.mrb[12].mxu1 %v283_v8  ;;  %v261_v23 = vmax.f32 %v207_v11, 0.0  ;;  %v1377_v8 = vld [vmem:[%s1807_s7 + $0x8] sm:$0xff]   ;;  %v1659_v11 = vrot.slane %v325_v10, %v79_v13 }
 0x112   :  { %v213_v22 = vadd.f32 %v212_v21, %v1605_v17  ;;  %v262_v25 = vmax.f32 %v209_v18, 0.0 }
 0x113   :  { %v263_v24 = vmax.f32 %v211_v20, 0.0 }
 0x114   :  { %v264_v26 = vmax.f32 %v213_v22, 0.0 }
 0x115   :  { %v285_v27 = vpack.c.bf16 %v263_v24, %v261_v23 }
 0x116   :  { %v286_v28 = vpack.c.bf16 %v264_v26, %v262_v25  ;;  %v216_v29 = vpop.f32.mrb[20].mxu0 }
 0x117   :  { %v217_v30 = vadd.f32 %v216_v29, %v1601_v16  ;;  %v218_v31 = vpop.f32.mrb[21].mxu0 }
 0x118   :  { %v219_v32 = vadd.f32 %v218_v31, %v1605_v17  ;;  %v220_v33 = vpop.f32.mrb[22].mxu0  ;;  %569 = vmatprep.mubr.bf16.mxu1 %v286_v28 }
 0x119   :  { %v221_v34 = vadd.f32 %v220_v33, %v1601_v16  ;;  %v222_v35 = vpop.f32.mrb[23].mxu0  ;;  %570 = vmatmul.mubr.bf16.gmra.mrb[16].mxu1 %v285_v27  ;;  %v265_v37 = vmax.f32 %v217_v30, 0.0 }
 0x11a   :  { %v223_v36 = vadd.f32 %v222_v35, %v1605_v17  ;;  %v266_v39 = vmax.f32 %v219_v32, 0.0 }
 0x11b   :  { %v267_v38 = vmax.f32 %v221_v34, 0.0 }
 0x11c   :  { %v268_v40 = vmax.f32 %v223_v36, 0.0 }
 0x11d   :  { %v287_v41 = vpack.c.bf16 %v267_v38, %v265_v37 }
 0x11e   :  { %v288_v42 = vpack.c.bf16 %v268_v40, %v266_v39  ;;  %v226_v43 = vpop.f32.mrb[24].mxu0 }
 0x11f   :  { %v227_v44 = vadd.f32 %v226_v43, %v1601_v16  ;;  %v228_v45 = vpop.f32.mrb[25].mxu0 }
 0x120   :  { %v229_v46 = vadd.f32 %v228_v45, %v1605_v17  ;;  %v230_v47 = vpop.f32.mrb[26].mxu0  ;;  %579 = vmatprep.mubr.bf16.mxu1 %v288_v42 }
 0x121   :  { %v231_v48 = vadd.f32 %v230_v47, %v1601_v16  ;;  %v232_v49 = vpop.f32.mrb[27].mxu0  ;;  %580 = vmatmul.mubr.bf16.gmra.mrb[20].mxu1 %v287_v41  ;;  %v269_v51 = vmax.f32 %v227_v44, 0.0 }
 0x122   :  { %v233_v50 = vadd.f32 %v232_v49, %v1605_v17  ;;  %v270_v53 = vmax.f32 %v229_v46, 0.0 }
 0x123   :  { %v271_v52 = vmax.f32 %v231_v48, 0.0 }
 0x124   :  { %v272_v54 = vmax.f32 %v233_v50, 0.0 }
 0x125   :  { %v289_v55 = vpack.c.bf16 %v271_v52, %v269_v51 }
 0x126   :  { %v290_v56 = vpack.c.bf16 %v272_v54, %v270_v53  ;;  %v236_v57 = vpop.f32.mrb[28].mxu0 }
 0x127   :  { %v237_v58 = vadd.f32 %v236_v57, %v1601_v16  ;;  %v238_v59 = vpop.f32.mrb[29].mxu0 }
 0x128   :  { %v239_v60 = vadd.f32 %v238_v59, %v1605_v17  ;;  %v240_v61 = vpop.f32.mrb[30].mxu0  ;;  %589 = vmatprep.mubr.bf16.mxu1 %v290_v56 }
 0x129   :  { %v241_v62 = vadd.f32 %v240_v61, %v1601_v16  ;;  %v242_v63 = vpop.f32.mrb[31].mxu0  ;;  %590 = vmatmul.mubr.bf16.gmra.mrb[24].mxu1 %v289_v55  ;;  %v273_v1 = vmax.f32 %v237_v58, 0.0  ;;  %v1375_v16 = vld [vmem:[%s1805_s5 + $0x38] sm:$0xff]  }
 0x12a   :  { %v243_v0 = vadd.f32 %v242_v63, %v1605_v17  ;;  %v274_v3 = vmax.f32 %v239_v60, 0.0  ;;  %1189 = vmatpush3.bf16.msra.mxu0 %v1375_v16  ;;  %v1376_v17 = vld [vmem:[%s1807_s7] sm:$0xff]  }
 0x12b   :  { %v275_v2 = vmax.f32 %v241_v62, 0.0  ;;  %1286 = vmatprep.subr.bf16.mxu1 %v1376_v17  ;;  %1254 = vmatprep.subr.bf16.mxu0 %v1376_v17 }
 0x12c   :  { %v276_v4 = vmax.f32 %v243_v0, 0.0  ;;  %1294 = vmatpush3.bf16.msra.mxu1 %v1376_v17 }
 0x12d   :  { %v291_v5 = vpack.c.bf16 %v275_v2, %v273_v1  ;;  %1287 = vmatprep.subr.bf16.mxu1 %v1377_v8 }
 0x12e   :  { %v292_v6 = vpack.c.bf16 %v276_v4, %v274_v3 }
 0x130   :  { %599 = vmatprep.mubr.bf16.mxu1 %v292_v6  ;;  %1295 = vmatpush3.bf16.msra.mxu1 %v1377_v8 }
 0x131   :  { %600 = vmatmul.mubr.bf16.gmra.mrb[28].mxu1 %v291_v5  ;;  %1288 = vmatprep.subr.bf16.mxu1 %v1378_v9 }
 0x134   :  { %1296 = vmatpush3.bf16.msra.mxu1 %v1378_v9 }
 0x1cc   :  { %v531_v18 = vpop.f32.mrb[0].mxu1 }
 0x1cd   :  { %v532_v19 = vadd.f32 %v531_v18, %v1659_v11  ;;  %v533_v20 = vpop.f32.mrb[1].mxu1 }
 0x1ce   :  { %v534_v21 = vadd.f32 %v533_v20, %v1663_v14  ;;  %v535_v22 = vpop.f32.mrb[2].mxu1 }
 0x1cf   :  { %v536_v23 = vadd.f32 %v535_v22, %v1659_v11  ;;  %v537_v24 = vpop.f32.mrb[3].mxu1  ;;  %v610_v26 = vmax.f32 %v532_v19, 0.0 }
 0x1d0   :  { %v538_v25 = vadd.f32 %v537_v24, %v1663_v14  ;;  %v611_v13 = vmax.f32 %v534_v21, 0.0 }
 0x1d1   :  { %v612_v27 = vmax.f32 %v536_v23, 0.0 }
 0x1d2   :  { %v613_v28 = vmax.f32 %v538_v25, 0.0 }
 0x1d3   :  { %v642_v29 = vpack.c.bf16 %v612_v27, %v610_v26 }
 0x1d4   :  { %v643_v12 = vpack.c.bf16 %v613_v28, %v611_v13  ;;  %v541_v15 = vpop.f32.mrb[4].mxu1 }
 0x1d5   :  { %v542_v30 = vadd.f32 %v541_v15, %v1659_v11  ;;  %v543_v31 = vpop.f32.mrb[5].mxu1 }
 0x1d6   :  { %v544_v32 = vadd.f32 %v543_v31, %v1663_v14  ;;  %v545_v33 = vpop.f32.mrb[6].mxu1  ;;  %825 = vmatprep.mubr.bf16.mxu0 %v643_v12 }
 0x1d7   :  { %v546_v34 = vadd.f32 %v545_v33, %v1659_v11  ;;  %v547_v35 = vpop.f32.mrb[7].mxu1  ;;  %826 = vmatmul.mubr.bf16.vlgmr.msra.gmra.mrb[32].mxu0 %v642_v29  ;;  %v614_v37 = vmax.f32 %v542_v30, 0.0 }
 0x1d8   :  { %v548_v36 = vadd.f32 %v547_v35, %v1663_v14  ;;  %1255 = vmatpush3.bf16.msra.mxu0 %v1376_v17  ;;  %v615_v39 = vmax.f32 %v544_v32, 0.0 }
 0x1d9   :  { %v616_v38 = vmax.f32 %v546_v34, 0.0  ;;  %1256 = vmatprep.subr.bf16.mxu0 %v1377_v8 }
 0x1da   :  { %v617_v40 = vmax.f32 %v548_v36, 0.0 }
 0x1db   :  { %v644_v41 = vpack.c.bf16 %v616_v38, %v614_v37 }
 0x1dc   :  { %v645_v42 = vpack.c.bf16 %v617_v40, %v615_v39  ;;  %v551_v43 = vpop.f32.mrb[8].mxu1  ;;  %1257 = vmatpush3.bf16.msra.mxu0 %v1377_v8 }
 0x1dd   :  { %v552_v44 = vadd.f32 %v551_v43, %v1659_v11  ;;  %v553_v45 = vpop.f32.mrb[9].mxu1  ;;  %1258 = vmatprep.subr.bf16.mxu0 %v1378_v9 }
 0x1de   :  { %v554_v46 = vadd.f32 %v553_v45, %v1663_v14  ;;  %v555_v47 = vpop.f32.mrb[10].mxu1  ;;  %833 = vmatprep.mubr.bf16.mxu0 %v645_v42 }
 0x1df   :  { %v556_v48 = vadd.f32 %v555_v47, %v1659_v11  ;;  %v557_v49 = vpop.f32.mrb[11].mxu1  ;;  %834 = vmatmul.mubr.bf16.gmra.mrb[36].mxu0 %v644_v41  ;;  %v618_v51 = vmax.f32 %v552_v44, 0.0 }
 0x1e0   :  { %v558_v50 = vadd.f32 %v557_v49, %v1663_v14  ;;  %1259 = vmatpush3.bf16.msra.mxu0 %v1378_v9  ;;  %v619_v53 = vmax.f32 %v554_v46, 0.0 }
 0x1e1   :  { %v620_v52 = vmax.f32 %v556_v48, 0.0 }
 0x1e2   :  { %v621_v54 = vmax.f32 %v558_v50, 0.0 }
 0x1e3   :  { %v646_v55 = vpack.c.bf16 %v620_v52, %v618_v51 }
 0x1e4   :  { %v647_v56 = vpack.c.bf16 %v621_v54, %v619_v53  ;;  %v561_v57 = vpop.f32.mrb[12].mxu1 }
 0x1e5   :  { %v562_v58 = vadd.f32 %v561_v57, %v1659_v11  ;;  %v563_v59 = vpop.f32.mrb[13].mxu1 }
 0x1e6   :  { %v564_v60 = vadd.f32 %v563_v59, %v1663_v14  ;;  %v565_v61 = vpop.f32.mrb[14].mxu1  ;;  %841 = vmatprep.mubr.bf16.mxu0 %v647_v56 }
 0x1e7   :  { %v566_v62 = vadd.f32 %v565_v61, %v1659_v11  ;;  %v567_v63 = vpop.f32.mrb[15].mxu1  ;;  %842 = vmatmul.mubr.bf16.gmra.mrb[40].mxu0 %v646_v55  ;;  %v622_v1 = vmax.f32 %v562_v58, 0.0 }
 0x1e8   :  { %v568_v0 = vadd.f32 %v567_v63, %v1663_v14  ;;  %v623_v3 = vmax.f32 %v564_v60, 0.0 }
 0x1e9   :  { %v624_v2 = vmax.f32 %v566_v62, 0.0 }
 0x1ea   :  { %v625_v4 = vmax.f32 %v568_v0, 0.0 }
 0x1eb   :  { %v648_v5 = vpack.c.bf16 %v624_v2, %v622_v1  ;;  %v1379_v1 = vld [vmem:[%s1807_s7 + $0x18] sm:$0xff]   ;;  %v1382_v2 = vld [vmem:[%s1807_s7 + $0x30] sm:$0xff]  }
 0x1ec   :  { %v649_v6 = vpack.c.bf16 %v625_v4, %v623_v3  ;;  %v571_v7 = vpop.f32.mrb[16].mxu1  ;;  %1260 = vmatprep.subr.bf16.mxu0 %v1379_v1  ;;  %1289 = vmatprep.subr.bf16.mxu1 %v1379_v1  ;;  %v1383_v3 = vld [vmem:[%s1807_s7 + $0x38] sm:$0xff]  }
 0x1ed   :  { %v572_v16 = vadd.f32 %v571_v7, %v1659_v11  ;;  %v573_v17 = vpop.f32.mrb[17].mxu1  ;;  %1261 = vmatpush3.bf16.msra.mxu0 %v1379_v1  ;;  %1297 = vmatpush3.bf16.msra.mxu1 %v1379_v1 }
 0x1ee   :  { %v574_v8 = vadd.f32 %v573_v17, %v1663_v14  ;;  %v575_v9 = vpop.f32.mrb[18].mxu1  ;;  %849 = vmatprep.mubr.bf16.mxu0 %v649_v6 }
 0x1ef   :  { %v576_v10 = vadd.f32 %v575_v9, %v1659_v11  ;;  %v577_v18 = vpop.f32.mrb[19].mxu1  ;;  %850 = vmatmul.mubr.bf16.gmra.mrb[44].mxu0 %v648_v5  ;;  %v626_v20 = vmax.f32 %v572_v16, 0.0  ;;  %v1715_v5 = vld [vmem:[%s1806_s6] ss:$0 sm:$0xff] }
 0x1f0   :  { %v578_v19 = vadd.f32 %v577_v18, %v1663_v14  ;;  %v627_v22 = vmax.f32 %v574_v8, 0.0 }
 0x1f1   :  { %v628_v21 = vmax.f32 %v576_v10, 0.0 }
 0x1f2   :  { %v629_v23 = vmax.f32 %v578_v19, 0.0 }
 0x1f3   :  { %v650_v24 = vpack.c.bf16 %v628_v21, %v626_v20 }
 0x1f4   :  { %v651_v25 = vpack.c.bf16 %v629_v23, %v627_v22  ;;  %v581_v26 = vpop.f32.mrb[20].mxu1 }
 0x1f5   :  { %v582_v27 = vadd.f32 %v581_v26, %v1659_v11  ;;  %v583_v13 = vpop.f32.mrb[21].mxu1 }
 0x1f6   :  { %v584_v28 = vadd.f32 %v583_v13, %v1663_v14  ;;  %v585_v29 = vpop.f32.mrb[22].mxu1  ;;  %857 = vmatprep.mubr.bf16.mxu0 %v651_v25 }
 0x1f7   :  { %v586_v12 = vadd.f32 %v585_v29, %v1659_v11  ;;  %v587_v15 = vpop.f32.mrb[23].mxu1  ;;  %858 = vmatmul.mubr.bf16.gmra.mrb[48].mxu0 %v650_v24  ;;  %v630_v31 = vmax.f32 %v582_v27, 0.0 }
 0x1f8   :  { %v588_v30 = vadd.f32 %v587_v15, %v1663_v14  ;;  %v631_v33 = vmax.f32 %v584_v28, 0.0 }
 0x1f9   :  { %v632_v32 = vmax.f32 %v586_v12, 0.0 }
 0x1fa   :  { %v633_v34 = vmax.f32 %v588_v30, 0.0 }
 0x1fb   :  { %v652_v35 = vpack.c.bf16 %v632_v32, %v630_v31 }
 0x1fc   :  { %v653_v36 = vpack.c.bf16 %v633_v34, %v631_v33  ;;  %v591_v37 = vpop.f32.mrb[24].mxu1 }
 0x1fd   :  { %v592_v38 = vadd.f32 %v591_v37, %v1659_v11  ;;  %v593_v39 = vpop.f32.mrb[25].mxu1 }
 0x1fe   :  { %v594_v40 = vadd.f32 %v593_v39, %v1663_v14  ;;  %v595_v41 = vpop.f32.mrb[26].mxu1  ;;  %865 = vmatprep.mubr.bf16.mxu0 %v653_v36 }
 0x1ff   :  { %v596_v42 = vadd.f32 %v595_v41, %v1659_v11  ;;  %v597_v43 = vpop.f32.mrb[27].mxu1  ;;  %866 = vmatmul.mubr.bf16.gmra.mrb[52].mxu0 %v652_v35  ;;  %v634_v45 = vmax.f32 %v592_v38, 0.0 }
 0x200   :  { %v598_v44 = vadd.f32 %v597_v43, %v1663_v14  ;;  %v635_v47 = vmax.f32 %v594_v40, 0.0 }
 0x201   :  { %v636_v46 = vmax.f32 %v596_v42, 0.0 }
 0x202   :  { %v637_v48 = vmax.f32 %v598_v44, 0.0 }
 0x203   :  { %v654_v49 = vpack.c.bf16 %v636_v46, %v634_v45 }
 0x204   :  { %v655_v50 = vpack.c.bf16 %v637_v48, %v635_v47  ;;  %v601_v51 = vpop.f32.mrb[28].mxu1 }
 0x205   :  { %v602_v52 = vadd.f32 %v601_v51, %v1659_v11  ;;  %v603_v53 = vpop.f32.mrb[29].mxu1 }
 0x206   :  { %v604_v54 = vadd.f32 %v603_v53, %v1663_v14  ;;  %v605_v55 = vpop.f32.mrb[30].mxu1  ;;  %873 = vmatprep.mubr.bf16.mxu0 %v655_v50 }
 0x207   :  { %v606_v56 = vadd.f32 %v605_v55, %v1659_v11  ;;  %v607_v57 = vpop.f32.mrb[31].mxu1  ;;  %874 = vmatmul.mubr.bf16.gmra.mrb[56].mxu0 %v654_v49  ;;  %v638_v59 = vmax.f32 %v602_v52, 0.0  ;;  %v1380_v11 = vld [vmem:[%s1807_s7 + $0x20] sm:$0xff]  }
 0x208   :  { %v608_v58 = vadd.f32 %v607_v57, %v1663_v14  ;;  %v639_v61 = vmax.f32 %v604_v54, 0.0  ;;  %1262 = vmatprep.subr.bf16.mxu0 %v1380_v11  ;;  %1290 = vmatprep.subr.bf16.mxu1 %v1380_v11  ;;  %v1381_v14 = vld [vmem:[%s1807_s7 + $0x28] sm:$0xff]  }
 0x209   :  { %v640_v60 = vmax.f32 %v606_v56, 0.0  ;;  %1263 = vmatpush3.bf16.msra.mxu0 %v1380_v11  ;;  %1298 = vmatpush3.bf16.msra.mxu1 %v1380_v11 }
 0x20a   :  { %v641_v62 = vmax.f32 %v608_v58, 0.0  ;;  %1264 = vmatprep.subr.bf16.mxu0 %v1381_v14  ;;  %1291 = vmatprep.subr.bf16.mxu1 %v1381_v14 }
 0x20b   :  { %v656_v63 = vpack.c.bf16 %v640_v60, %v638_v59 }
 0x20c   :  { %v657_v0 = vpack.c.bf16 %v641_v62, %v639_v61 }
 0x20d   :  { %1265 = vmatpush3.bf16.msra.mxu0 %v1381_v14  ;;  %1299 = vmatpush3.bf16.msra.mxu1 %v1381_v14 }
 0x20e   :  { %881 = vmatprep.mubr.bf16.mxu0 %v657_v0  ;;  %1266 = vmatprep.subr.bf16.mxu0 %v1382_v2 }
 0x20f   :  { %882 = vmatmul.mubr.bf16.gmra.mrb[60].mxu0 %v656_v63  ;;  %1292 = vmatprep.subr.bf16.mxu1 %v1382_v2 }
 0x211   :  { %1267 = vmatpush3.bf16.msra.mxu0 %v1382_v2  ;;  %1300 = vmatpush3.bf16.msra.mxu1 %v1382_v2 }
 0x212   :  { %1268 = vmatprep.subr.bf16.mxu0 %v1383_v3  ;;  %1293 = vmatprep.subr.bf16.mxu1 %v1383_v3 }
 0x215   :  { %1269 = vmatpush3.bf16.msra.mxu0 %v1383_v3  ;;  %1301 = vmatpush3.bf16.msra.mxu1 %v1383_v3 }
 0x2aa   :  { %v1190_v4 = vpop.f32.mrb[32].mxu0 }
 0x2ab   :  { %v1191_v6 = vpop.f32.mrb[33].mxu0 }
 0x2ac   :  { %v1192_v7 = vadd.f32 %v1191_v6, %v1190_v4  ;;  %v1193_v16 = vpop.f32.mrb[34].mxu0 }
 0x2ad   :  { %v1194_v17 = vpop.f32.mrb[35].mxu0 }
 0x2ae   :  { %v828_v8 = vadd.f32 %v1192_v7, %v1715_v5  ;;  %v1195_v9 = vadd.f32 %v1194_v17, %v1193_v16 }
 0x2b0   :  { %v831_v10 = vadd.f32 %v1195_v9, %v1715_v5  ;;  %v890_v18 = vmax.f32 %v828_v8, 0.0 }
 0x2b2   :  { %v891_v19 = vmax.f32 %v831_v10, 0.0  ;;  %v1196_v20 = vpop.f32.mrb[36].mxu0 }
 0x2b3   :  { %v1197_v21 = vpop.f32.mrb[37].mxu0 }
 0x2b4   :  { %v1198_v22 = vadd.f32 %v1197_v21, %v1196_v20  ;;  %v1199_v23 = vpop.f32.mrb[38].mxu0  ;;  %v906_v24 = vpack.c.bf16 %v891_v19, %v890_v18 }
 0x2b5   :  { %v1200_v25 = vpop.f32.mrb[39].mxu0 }
 0x2b6   :  { %v836_v26 = vadd.f32 %v1198_v22, %v1715_v5  ;;  %v1201_v27 = vadd.f32 %v1200_v25, %v1199_v23  ;;  %1270 = vmatprep.mubr.bf16.mxu0 %v906_v24 }
 0x2b8   :  { %v839_v13 = vadd.f32 %v1201_v27, %v1715_v5  ;;  %v892_v28 = vmax.f32 %v836_v26, 0.0 }
 0x2ba   :  { %v893_v29 = vmax.f32 %v839_v13, 0.0  ;;  %v1202_v12 = vpop.f32.mrb[40].mxu0 }
 0x2bb   :  { %v1203_v15 = vpop.f32.mrb[41].mxu0 }
 0x2bc   :  { %v907_v30 = vpack.c.bf16 %v893_v29, %v892_v28  ;;  %v1204_v31 = vadd.f32 %v1203_v15, %v1202_v12  ;;  %v1205_v32 = vpop.f32.mrb[42].mxu0 }
 0x2bd   :  { %v1206_v33 = vpop.f32.mrb[43].mxu0 }
 0x2be   :  { %v844_v34 = vadd.f32 %v1204_v31, %v1715_v5  ;;  %v1207_v35 = vadd.f32 %v1206_v33, %v1205_v32  ;;  %1271 = vmatmul.mubr.bf16.vlgmr.msra.gmra.mrb[64].mxu0 %v907_v30  ;;  %v1165_v32 = vld [vmem:[%s1808_s8] ss:$0 sm:$0xff] }
 0x2c0   :  { %v847_v36 = vadd.f32 %v1207_v35, %v1715_v5  ;;  %v894_v37 = vmax.f32 %v844_v34, 0.0 }
 0x2c2   :  { %v895_v38 = vmax.f32 %v847_v36, 0.0  ;;  %v1208_v39 = vpop.f32.mrb[44].mxu0 }
 0x2c3   :  { %v1209_v40 = vpop.f32.mrb[45].mxu0 }
 0x2c4   :  { %v1210_v41 = vadd.f32 %v1209_v40, %v1208_v39  ;;  %v1211_v42 = vpop.f32.mrb[46].mxu0  ;;  %v908_v43 = vpack.c.bf16 %v895_v38, %v894_v37 }
 0x2c5   :  { %v1212_v44 = vpop.f32.mrb[47].mxu0 }
 0x2c6   :  { %v852_v45 = vadd.f32 %v1210_v41, %v1715_v5  ;;  %v1213_v46 = vadd.f32 %v1212_v44, %v1211_v42  ;;  %1274 = vmatprep.mubr.bf16.mxu1 %v908_v43 }
 0x2c8   :  { %v855_v47 = vadd.f32 %v1213_v46, %v1715_v5  ;;  %v896_v48 = vmax.f32 %v852_v45, 0.0 }
 0x2ca   :  { %v897_v49 = vmax.f32 %v855_v47, 0.0  ;;  %v1214_v50 = vpop.f32.mrb[48].mxu0 }
 0x2cb   :  { %v1215_v51 = vpop.f32.mrb[49].mxu0 }
 0x2cc   :  { %v909_v52 = vpack.c.bf16 %v897_v49, %v896_v48  ;;  %v1216_v53 = vadd.f32 %v1215_v51, %v1214_v50  ;;  %v1217_v54 = vpop.f32.mrb[50].mxu0 }
 0x2cd   :  { %v1218_v55 = vpop.f32.mrb[51].mxu0 }
 0x2ce   :  { %v860_v56 = vadd.f32 %v1216_v53, %v1715_v5  ;;  %v1219_v57 = vadd.f32 %v1218_v55, %v1217_v54  ;;  %1275 = vmatmul.mubr.bf16.vlgmr.msra.gmra.mrb[32].mxu1 %v909_v52 }
 0x2d0   :  { %v863_v58 = vadd.f32 %v1219_v57, %v1715_v5  ;;  %v898_v59 = vmax.f32 %v860_v56, 0.0 }
 0x2d2   :  { %v899_v60 = vmax.f32 %v863_v58, 0.0  ;;  %v1220_v61 = vpop.f32.mrb[52].mxu0 }
 0x2d3   :  { %v1221_v62 = vpop.f32.mrb[53].mxu0 }
 0x2d4   :  { %v1222_v63 = vadd.f32 %v1221_v62, %v1220_v61  ;;  %v1223_v0 = vpop.f32.mrb[54].mxu0  ;;  %v910_v1 = vpack.c.bf16 %v899_v60, %v898_v59 }
 0x2d5   :  { %v1224_v11 = vpop.f32.mrb[55].mxu0 }
 0x2d6   :  { %v868_v14 = vadd.f32 %v1222_v63, %v1715_v5  ;;  %v1225_v2 = vadd.f32 %v1224_v11, %v1223_v0  ;;  %1278 = vmatprep.mubr.bf16.mxu1 %v910_v1 }
 0x2d8   :  { %v871_v3 = vadd.f32 %v1225_v2, %v1715_v5  ;;  %v900_v4 = vmax.f32 %v868_v14, 0.0 }
 0x2da   :  { %v901_v6 = vmax.f32 %v871_v3, 0.0  ;;  %v1226_v7 = vpop.f32.mrb[56].mxu0 }
 0x2db   :  { %v1227_v16 = vpop.f32.mrb[57].mxu0 }
 0x2dc   :  { %v1228_v17 = vadd.f32 %v1227_v16, %v1226_v7  ;;  %v1229_v8 = vpop.f32.mrb[58].mxu0  ;;  %v911_v9 = vpack.c.bf16 %v901_v6, %v900_v4 }
 0x2dd   :  { %v1230_v10 = vpop.f32.mrb[59].mxu0 }
 0x2de   :  { %v876_v18 = vadd.f32 %v1228_v17, %v1715_v5  ;;  %v1231_v19 = vadd.f32 %v1230_v10, %v1229_v8  ;;  %1279 = vmatmul.mubr.bf16.gmra.mrb[36].mxu1 %v911_v9 }
 0x2e0   :  { %v879_v20 = vadd.f32 %v1231_v19, %v1715_v5  ;;  %v902_v21 = vmax.f32 %v876_v18, 0.0 }
 0x2e2   :  { %v903_v22 = vmax.f32 %v879_v20, 0.0  ;;  %v1232_v23 = vpop.f32.mrb[60].mxu0 }
 0x2e3   :  { %v1233_v24 = vpop.f32.mrb[61].mxu0 }
 0x2e4   :  { %v1234_v25 = vadd.f32 %v1233_v24, %v1232_v23  ;;  %v1235_v26 = vpop.f32.mrb[62].mxu0  ;;  %v912_v27 = vpack.c.bf16 %v903_v22, %v902_v21 }
 0x2e5   :  { %v1236_v13 = vpop.f32.mrb[63].mxu0 }
 0x2e6   :  { %v884_v28 = vadd.f32 %v1234_v25, %v1715_v5  ;;  %v1237_v29 = vadd.f32 %v1236_v13, %v1235_v26  ;;  %1282 = vmatprep.mubr.bf16.mxu1 %v912_v27 }
 0x2e8   :  { %v887_v12 = vadd.f32 %v1237_v29, %v1715_v5  ;;  %v904_v15 = vmax.f32 %v884_v28, 0.0 }
 0x2ea   :  { %v905_v30 = vmax.f32 %v887_v12, 0.0 }
 0x2ec   :  { %v913_v31 = vpack.c.bf16 %v905_v30, %v904_v15 }
 0x2ee   :  { %1283 = vmatmul.mubr.bf16.gmra.mrb[40].mxu1 %v913_v31 }
 0x391   :  { %v1272_v33 = vpop.f32.mrb[64].mxu0 }
 0x392   :  { %v1028_v34 = vadd.f32 %v1272_v33, %v1165_v32  ;;  %v1019_v35 = vpop.f32.mrb[65].mxu0 }
 0x393   :  { %v1020_v36 = vadd.f32 %v1165_v32, %v1019_v35  ;;  %v1273_v37 = vpop.f32.mrb[66].mxu0 }
 0x394   :  { %1085 = vst.msk [vmem:[%s1809_s9 + $0x10] sm:$0xff] %vm1082_vm1, %v1028_v34  ;;  %v1031_v5 = vadd.f32 %v1273_v37, %v1165_v32  ;;  %v1022_v38 = vpop.f32.mrb[67].mxu0 }
 0x395   :  { %1083 = vst.msk [vmem:[%s1809_s9] sm:$0xff] %vm1082_vm1, %v1020_v36  ;;  %v1023_v39 = vadd.f32 %v1165_v32, %v1022_v38 }
 0x396   :  { %1086 = vst.msk [vmem:[%s1809_s9 + $0x18] sm:$0xff] %vm1082_vm1, %v1031_v5 }
 0x397   :  { %1084 = vst.msk [vmem:[%s1809_s9 + $0x8] sm:$0xff] %vm1082_vm1, %v1023_v39 }
 0x3a1   :  { %v1276_v40 = vpop.f32.mrb[32].mxu1 }
 0x3a2   :  { %v1044_v41 = vadd.f32 %v1276_v40, %v1165_v32  ;;  %v1035_v42 = vpop.f32.mrb[33].mxu1 }
 0x3a3   :  { %v1036_v43 = vadd.f32 %v1165_v32, %v1035_v42  ;;  %v1277_v44 = vpop.f32.mrb[34].mxu1 }
 0x3a4   :  { %1089 = vst.msk [vmem:[%s1809_s9 + $0x30] sm:$0xff] %vm1082_vm1, %v1044_v41  ;;  %v1047_v45 = vadd.f32 %v1277_v44, %v1165_v32  ;;  %v1038_v46 = vpop.f32.mrb[35].mxu1 }
 0x3a5   :  { %1087 = vst.msk [vmem:[%s1809_s9 + $0x20] sm:$0xff] %vm1082_vm1, %v1036_v43  ;;  %v1039_v47 = vadd.f32 %v1165_v32, %v1038_v46 }
 0x3a6   :  { %1090 = vst.msk [vmem:[%s1809_s9 + $0x38] sm:$0xff] %vm1082_vm1, %v1047_v45 }
 0x3a7   :  { %1088 = vst.msk [vmem:[%s1809_s9 + $0x28] sm:$0xff] %vm1082_vm1, %v1039_v47 }
 0x3b1   :  { %v1280_v48 = vpop.f32.mrb[36].mxu1 }
 0x3b2   :  { %v1060_v49 = vadd.f32 %v1280_v48, %v1165_v32  ;;  %v1051_v50 = vpop.f32.mrb[37].mxu1 }
 0x3b3   :  { %v1052_v51 = vadd.f32 %v1165_v32, %v1051_v50  ;;  %v1281_v52 = vpop.f32.mrb[38].mxu1 }
 0x3b4   :  { %1093 = vst.msk [vmem:[%s1809_s9 + $0x50] sm:$0xff] %vm1082_vm1, %v1060_v49  ;;  %v1063_v53 = vadd.f32 %v1281_v52, %v1165_v32  ;;  %v1054_v54 = vpop.f32.mrb[39].mxu1 }
 0x3b5   :  { %1091 = vst.msk [vmem:[%s1809_s9 + $0x40] sm:$0xff] %vm1082_vm1, %v1052_v51  ;;  %v1055_v55 = vadd.f32 %v1165_v32, %v1054_v54 }
 0x3b6   :  { %1094 = vst.msk [vmem:[%s1809_s9 + $0x58] sm:$0xff] %vm1082_vm1, %v1063_v53 }
 0x3b7   :  { %1092 = vst.msk [vmem:[%s1809_s9 + $0x48] sm:$0xff] %vm1082_vm1, %v1055_v55 }
 0x3c1   :  { %v1284_v56 = vpop.f32.mrb[40].mxu1 }
 0x3c2   :  { %v1076_v57 = vadd.f32 %v1284_v56, %v1165_v32  ;;  %v1067_v58 = vpop.f32.mrb[41].mxu1 }
 0x3c3   :  { %v1068_v59 = vadd.f32 %v1165_v32, %v1067_v58  ;;  %v1285_v60 = vpop.f32.mrb[42].mxu1 }
 0x3c4   :  { %1097 = vst.msk [vmem:[%s1809_s9 + $0x70] sm:$0xff] %vm1082_vm1, %v1076_v57  ;;  %v1079_v61 = vadd.f32 %v1285_v60, %v1165_v32  ;;  %v1070_v62 = vpop.f32.mrb[43].mxu1 }
 0x3c5   :  { %1095 = vst.msk [vmem:[%s1809_s9 + $0x60] sm:$0xff] %vm1082_vm1, %v1068_v59  ;;  %v1071_v63 = vadd.f32 %v1165_v32, %v1070_v62 }
 0x3c6   :  { %1098 = vst.msk [vmem:[%s1809_s9 + $0x78] sm:$0xff] %vm1082_vm1, %v1079_v61 }
 0x3c7   :  { %1096 = vst.msk [vmem:[%s1809_s9 + $0x68] sm:$0xff] %vm1082_vm1, %v1071_v63 }
 0x3c8   :  { %1103 = vsyncpa [#allocation3], 1 }

</bundles_post_ra>
